<compile_context>
chip_gen: v7x
topology: tpu7x:2x2x1
jax: 0.10.0
libtpu: 0.0.40
codegen_flags: <defaults>
</compile_context>

<pallas_src>
import functools

import jax
import jax.numpy as jnp
from jax.experimental import pallas as pl
from jax.experimental.pallas import tpu as pltpu


# ----------------------------------------------------------------------------
# Pass 1: tiled diffusion + node-wise MLP logits + mean-pool partials
# ----------------------------------------------------------------------------
def diffuse_node_kernel(ahat_ref, xc_ref, xr_ref, pool_ref,
                        w1n_ref, b1n_ref, w2n_ref, b2n_ref,
                        diffuse_ref, g_ref, pp_ref,
                        acc_ref, *, alpha_teleport):
    j = pl.program_id(1)

    @pl.when(j == 0)
    def _():
        acc_ref[...] = jnp.zeros_like(acc_ref)

    # Dominant O(N^2 * D) work: bf16 x bf16 -> f32 accumulate on the MXU.
    acc_ref[...] += jnp.dot(ahat_ref[...], xc_ref[...],
                            preferred_element_type=jnp.float32)

    @pl.when(j == pl.num_programs(1) - 1)
    def _():
        x_row = xr_ref[...]                                          # [TN, D] f32
        diffuse = (1.0 - alpha_teleport) * acc_ref[...] + alpha_teleport * x_row
        diffuse_ref[...] = diffuse

        # node-wise MLP -> softmax logits (softmax normalization is global,
        # done between the two passes).
        h = jnp.maximum(
            jnp.dot(diffuse, w1n_ref[...], preferred_element_type=jnp.float32)
            + b1n_ref[...], 0.0)                                     # [TN, D]
        # Width-1 output head: VPU multiply + lane reduce instead of a
        # [TN,D]x[D,1] matmul that lights up one MXU output lane.
        g_ref[...] = (jnp.sum(h * w2n_ref[...], axis=-1, keepdims=True)
                      + b2n_ref[0, 0])                               # [TN, 1]

        # Partial mean-pool contribution of this row tile: [B,TN] @ [TN,D].
        pp_ref[0] = jnp.dot(pool_ref[...], diffuse,
                            preferred_element_type=jnp.float32)      # [B, D]


# ----------------------------------------------------------------------------
# Pass 2: channel-wise MLP (alpha half only) + K-way gating
# ----------------------------------------------------------------------------
def gating_kernel(x_ref, sel_ref, gamma_ref, pooled_ref,
                  w1c_ref, b1c_ref, w2c_ref, b2c_ref,
                  out_ref, *, K):
    # Channel MLP on the pooled graph embedding (tiny, [B, D]); only the used
    # alpha half of the output weights is passed in, pre-split per k.
    hc = jnp.maximum(
        jnp.dot(pooled_ref[...], w1c_ref[...], preferred_element_type=jnp.float32)
        + b1c_ref[...], 0.0)                                         # [B, D]

    # Factor the gating arithmetic: out = max_k a_k*gamma*x + a_k*gamma
    #                                     = max_k a_k * (gamma * (x + 1)).
    gx = gamma_ref[...] * (x_ref[...] + 1.0)                         # [TN, D]
    sel = sel_ref[...]                                               # [TN, B]

    acc = None
    for k in range(K):            # K static & small; leading-axis index is free
        alpha_k = jnp.tanh(
            jnp.dot(hc, w2c_ref[k], preferred_element_type=jnp.float32)
            + b2c_ref[k])                                            # [B, D]
        node_alpha = jnp.dot(sel, alpha_k,
                             preferred_element_type=jnp.float32)     # [TN, D]
        cand = node_alpha * gx
        acc = cand if acc is None else jnp.maximum(acc, cand)
    out_ref[...] = acc


# ----------------------------------------------------------------------------
# Wrapper
# ----------------------------------------------------------------------------
def grelu_forward(x, a_hat, sel, pool_mat, params, *, K, emb_dim,
                  alpha_teleport=0.1, row_tile=256, col_tile=512):
    N, D = x.shape
    B = pool_mat.shape[0]
    assert D == emb_dim

    TN = min(row_tile, N)
    TC = min(col_tile, N)
    assert N % TN == 0 and N % TC == 0, "N must divide the tile sizes"
    n_row, n_col = N // TN, N // TC

    # bf16 for the big MXU operands (halves HBM/VMEM traffic of O(N^2) a_hat;
    # full-rate bf16 MXU on v6e/v7x).  Elementwise / softmax math stays f32.
    a_hat_b = a_hat.astype(jnp.bfloat16)
    x_b = x.astype(jnp.bfloat16)

    # Layout-friendly parameter prep (once, outside the kernels).
    w2n_row = params["w2n"].reshape(1, D)                            # [1, D]
    b2n = params["b2n"].reshape(1, 1)                                # SMEM scalar
    # Keep only the used (alpha) half of the channel-MLP output and split it
    # per k -> in-kernel slicing becomes a zero-cost leading-axis index.
    w2c_k = params["w2c"][:, :K * D].reshape(D, K, D).transpose(1, 0, 2)  # [K,D,D]
    b2c_k = params["b2c"][:, :K * D].reshape(K, 1, D)                      # [K,1,D]

    vmem_limit = 32 * 1024 * 1024
    smem = pltpu.MemorySpace.SMEM

    kernel1 = functools.partial(diffuse_node_kernel, alpha_teleport=alpha_teleport)
    diffuse, g, pooled_partial = pl.pallas_call(
        kernel1,
        out_shape=(jax.ShapeDtypeStruct((N, D), jnp.float32),
                   jax.ShapeDtypeStruct((N, 1), jnp.float32),
                   jax.ShapeDtypeStruct((n_row, B, D), jnp.float32)),
        grid_spec=pltpu.PrefetchScalarGridSpec(
            num_scalar_prefetch=0,
            grid=(n_row, n_col),
            in_specs=[
                pl.BlockSpec((TN, TC), lambda i, j: (i, j)),     # a_hat (bf16)
                pl.BlockSpec((TC, D), lambda i, j: (j, 0)),      # x (bf16, contraction)
                pl.BlockSpec((TN, D), lambda i, j: (i, 0)),      # x (f32, rows)
                pl.BlockSpec((B, TN), lambda i, j: (0, i)),      # pool_mat cols
                pl.BlockSpec((D, D), lambda i, j: (0, 0)),       # w1n
                pl.BlockSpec((1, D), lambda i, j: (0, 0)),       # b1n
                pl.BlockSpec((1, D), lambda i, j: (0, 0)),       # w2n row
                pl.BlockSpec(memory_space=smem),                 # b2n scalar
            ],
            out_specs=(
                pl.BlockSpec((TN, D), lambda i, j: (i, 0)),      # diffuse
                pl.BlockSpec((TN, 1), lambda i, j: (i, 0)),      # g logits
                pl.BlockSpec((1, B, D), lambda i, j: (i, 0, 0)), # pool partials
            ),
            scratch_shapes=[pltpu.VMEM((TN, D), jnp.float32)],
        ),
        compiler_params=pltpu.CompilerParams(
            dimension_semantics=("parallel", "arbitrary"),
            vmem_limit_bytes=vmem_limit),
        cost_estimate=pl.CostEstimate(
            flops=2 * N * N * D + 2 * N * D * D + 2 * N * B * D,
            transcendentals=0,
            bytes_accessed=N * N * 2 + 4 * N * D * 4),
    )(a_hat_b, x_b, x, pool_mat,
      params["w1n"], params["b1n"], w2n_row, b2n)

    # O(N) / O(B*D) glue between the two passes (two-pass global softmax).
    gamma = jax.nn.softmax(g, axis=0)                                # [N, 1]
    pooled = jnp.sum(pooled_partial, axis=0)                         # [B, D]

    kernel2 = functools.partial(gating_kernel, K=K)
    out = pl.pallas_call(
        kernel2,
        out_shape=jax.ShapeDtypeStruct((N, D), jnp.float32),
        grid_spec=pltpu.PrefetchScalarGridSpec(
            num_scalar_prefetch=0,
            grid=(n_row,),
            in_specs=[
                pl.BlockSpec((TN, D), lambda i: (i, 0)),         # x (f32)
                pl.BlockSpec((TN, B), lambda i: (i, 0)),         # sel
                pl.BlockSpec((TN, 1), lambda i: (i, 0)),         # gamma
                pl.BlockSpec((B, D), lambda i: (0, 0)),          # pooled
                pl.BlockSpec((D, D), lambda i: (0, 0)),          # w1c
                pl.BlockSpec((1, D), lambda i: (0, 0)),          # b1c
                pl.BlockSpec((K, D, D), lambda i: (0, 0, 0)),    # w2c (alpha half, per-k)
                pl.BlockSpec((K, 1, D), lambda i: (0, 0, 0)),    # b2c (alpha half, per-k)
            ],
            out_specs=pl.BlockSpec((TN, D), lambda i: (i, 0)),
        ),
        compiler_params=pltpu.CompilerParams(
            dimension_semantics=("parallel",),
            vmem_limit_bytes=vmem_limit),
        cost_estimate=pl.CostEstimate(
            flops=2 * B * D * D * (1 + K) * n_row + 2 * N * B * D * K + 2 * N * D * K,
            transcendentals=B * D * K * n_row,
            bytes_accessed=4 * N * D * 3),
    )(x, sel, gamma, pooled, params["w1c"], params["b1c"], w2c_k, b2c_k)
    return out


# ----------------------------------------------------------------------------
# Pure-JAX reference (mirrors the PyTorch forward; same mixed precision)
# ----------------------------------------------------------------------------
def grelu_ref(x, a_hat, sel, pool_mat, p, *, K, emb_dim, alpha_teleport=0.1):
    D = emb_dim
    ax = jnp.dot(a_hat.astype(jnp.bfloat16), x.astype(jnp.bfloat16),
                 preferred_element_type=jnp.float32)
    diffuse = (1.0 - alpha_teleport) * ax + alpha_teleport * x
    h = jax.nn.relu(diffuse @ p["w1n"] + p["b1n"])
    g = h @ p["w2n"] + p["b2n"]
    gamma = jax.nn.softmax(g, axis=0)
    pooled = pool_mat @ diffuse
    hc = jax.nn.relu(pooled @ p["w1c"] + p["b1c"])
    pc = jnp.tanh(hc @ p["w2c"] + p["b2c"])
    alpha_flat = pc[:, : K * D]          # beta half discarded (reference bug kept)
    node_alpha = sel @ alpha_flat
    cands = []
    for k in range(K):
        a_k = node_alpha[:, k * D:(k + 1) * D]
        cands.append(a_k * (gamma * (x + 1.0)))
    return jnp.max(jnp.stack(cands, axis=0), axis=0)


# ----------------------------------------------------------------------------
# Graph preprocessing glue (plain JAX)
# ----------------------------------------------------------------------------
def build_dense_graph(edge_index, batch, num_nodes, num_graphs):
    """GCN-normalized dense adjacency (with self loops), one-hot + mean-pool mats."""
    src, dst = edge_index[0], edge_index[1]
    adj = jnp.zeros((num_nodes, num_nodes), jnp.float32).at[dst, src].set(1.0)
    adj = adj + jnp.eye(num_nodes, dtype=jnp.float32)
    deg = jnp.sum(adj, axis=1)
    d_inv_sqrt = 1.0 / jnp.sqrt(deg)
    a_hat = d_inv_sqrt[:, None] * adj * d_inv_sqrt[None, :]

    sel = (batch[:, None] == jnp.arange(num_graphs)[None, :]).astype(jnp.float32)
    counts = jnp.sum(sel, axis=0)
    pool_mat = (sel / counts[None, :]).T                     # [B, N]
    return a_hat, sel, pool_mat


def init_params(key, emb_dim, K):
    ks = jax.random.split(key, 8)
    s = 1.0 / jnp.sqrt(emb_dim)
    return {
        "w1n": jax.random.uniform(ks[0], (emb_dim, emb_dim), jnp.float32, -s, s),
        "b1n": jax.random.uniform(ks[1], (1, emb_dim), jnp.float32, -s, s),
        "w2n": jax.random.uniform(ks[2], (emb_dim, 1), jnp.float32, -s, s),
        "b2n": jax.random.uniform(ks[3], (1, 1), jnp.float32, -s, s),
        "w1c": jax.random.uniform(ks[4], (emb_dim, emb_dim), jnp.float32, -s, s),
        "b1c": jax.random.uniform(ks[5], (1, emb_dim), jnp.float32, -s, s),
        "w2c": jax.random.uniform(ks[6], (emb_dim, 2 * K * emb_dim), jnp.float32, -s, s),
        "b2c": jax.random.uniform(ks[7], (1, 2 * K * emb_dim), jnp.float32, -s, s),
    }


if __name__ == "__main__":
    K = 2
    EMB = 64
    N_PER_GRAPH = 8
    B = 2
    N = N_PER_GRAPH * B

    key = jax.random.PRNGKey(0)
    k_x, k_p = jax.random.split(key)

    x = jax.random.normal(k_x, (N, EMB), jnp.float32)

    # batch assignment (sorted, as PyG assumes) and a ring graph per component
    batch = jnp.repeat(jnp.arange(B), N_PER_GRAPH)
    src_list, dst_list = [], []
    for b in range(B):
        off = b * N_PER_GRAPH
        for i in range(N_PER_GRAPH):
            j = (i + 1) % N_PER_GRAPH
            src_list += [off + i, off + j]
            dst_list += [off + j, off + i]
    edge_index = jnp.array([src_list, dst_list], dtype=jnp.int32)
    edge_attr = jnp.ones((edge_index.shape[1], 1), jnp.float32)  # unused, as in reference

    a_hat, sel, pool_mat = build_dense_graph(edge_index, batch, N, B)
    params = init_params(k_p, EMB, K)

    out = grelu_forward(x, a_hat, sel, pool_mat, params, K=K, emb_dim=EMB)
    out = jax.block_until_ready(out)

    ref = grelu_ref(x, a_hat, sel, pool_mat, params, K=K, emb_dim=EMB)
    assert out.shape == (N, EMB)
    assert jnp.allclose(out, ref, atol=2e-3, rtol=2e-3), "mismatch vs. JAX reference"

    print("KERNEL_OK")
</pallas_src>

<mosaic_0001>
module attributes {stable_mosaic.version = 11 : i64} {
  func.func @diffuse_node_kernel(%arg0: i32, %arg1: i32, %arg2: memref<16x16xbf16, #tpu.memory_space<vmem>>, %arg3: memref<16x64xbf16, #tpu.memory_space<vmem>>, %arg4: memref<16x64xf32, #tpu.memory_space<vmem>>, %arg5: memref<2x16xf32, #tpu.memory_space<vmem>>, %arg6: memref<64x64xf32, #tpu.memory_space<vmem>>, %arg7: memref<1x64xf32, #tpu.memory_space<vmem>>, %arg8: memref<1x64xf32, #tpu.memory_space<vmem>>, %arg9: memref<1x1xf32, #tpu.memory_space<smem>>, %arg10: memref<16x64xf32, #tpu.memory_space<vmem>>, %arg11: memref<16x1xf32, #tpu.memory_space<vmem>>, %arg12: memref<1x2x64xf32, #tpu.memory_space<vmem>>, %arg13: memref<16x64xf32, #tpu.memory_space<vmem>>) attributes {dimension_semantics = [#tpu.dimension_semantics<parallel>, #tpu.dimension_semantics<arbitrary>], iteration_bounds = array<i64: 1, 1>, scalar_prefetch = 0 : i64, scratch_operands = 1 : i64, tpu.core_type = #tpu.core_type<tc>, window_params = [{transform_indices = @transform_0, window_bounds = array<i64: 16, 16>}, {transform_indices = @transform_1, window_bounds = array<i64: 16, 64>}, {transform_indices = @transform_2, window_bounds = array<i64: 16, 64>}, {transform_indices = @transform_3, window_bounds = array<i64: 2, 16>}, {pipeline_mode = #tpu.pipeline_mode<synchronous>, transform_indices = @transform_4, window_bounds = array<i64: 64, 64>}, {pipeline_mode = #tpu.pipeline_mode<synchronous>, transform_indices = @transform_5, window_bounds = array<i64: 1, 64>}, {pipeline_mode = #tpu.pipeline_mode<synchronous>, transform_indices = @transform_6, window_bounds = array<i64: 1, 64>}, {transform_indices = @transform_7, window_bounds = array<i64: 1, 1>}, {transform_indices = @transform_8, window_bounds = array<i64: 16, 64>}, {transform_indices = @transform_9, window_bounds = array<i64: 16, 1>}, {transform_indices = @transform_10, window_bounds = array<i64: 1, 2, 64>}]} {
    %c0_i32 = arith.constant 0 : i32
    %0 = arith.cmpi eq, %arg1, %c0_i32 : i32
    %1 = arith.extui %0 : i1 to i32
    %c0_i32_0 = arith.constant 0 : i32
    %2 = arith.cmpi ne, %1, %c0_i32_0 : i32
    scf.if %2 {
      %cst_10 = arith.constant 0.000000e+00 : f32
      %12 = vector.broadcast %cst_10 : f32 to vector<16x64xf32>
      %c0_11 = arith.constant 0 : index
      %c0_12 = arith.constant 0 : index
      %13 = vector.load %arg13[%c0_11, %c0_12] : memref<16x64xf32, #tpu.memory_space<vmem>>, vector<16x64xf32>
      tpu.vector_store %arg13[%c0_11, %c0_12], %12 {strides = array<i32>} : memref<16x64xf32, #tpu.memory_space<vmem>>, vector<16x64xf32>,
    } else {
    }
    %c0 = arith.constant 0 : index
    %c0_1 = arith.constant 0 : index
    %3 = vector.load %arg13[%c0, %c0_1] : memref<16x64xf32, #tpu.memory_space<vmem>>, vector<16x64xf32>
    %c0_2 = arith.constant 0 : index
    %c0_3 = arith.constant 0 : index
    %4 = vector.load %arg2[%c0_2, %c0_3] : memref<16x16xbf16, #tpu.memory_space<vmem>>, vector<16x16xbf16>
    %c0_4 = arith.constant 0 : index
    %c0_5 = arith.constant 0 : index
    %5 = vector.load %arg3[%c0_4, %c0_5] : memref<16x64xbf16, #tpu.memory_space<vmem>>, vector<16x64xbf16>
    %cst = arith.constant dense<0.000000e+00> : vector<16x64xf32>
    %6 = tpu.matmul %4, %5, %cst {dimension_numbers = #tpu.dot_dimension_numbers<[1], [0], [0], [1], [0, 0, 1, 1], [], []>} : vector<16x16xbf16>, vector<16x64xbf16>, vector<16x64xf32> -> vector<16x64xf32>
    %7 = arith.addf %3, %6 : vector<16x64xf32>
    %c0_6 = arith.constant 0 : index
    %c0_7 = arith.constant 0 : index
    %8 = vector.load %arg13[%c0_6, %c0_7] : memref<16x64xf32, #tpu.memory_space<vmem>>, vector<16x64xf32>
    tpu.vector_store %arg13[%c0_6, %c0_7], %7 {strides = array<i32>} : memref<16x64xf32, #tpu.memory_space<vmem>>, vector<16x64xf32>,
    %c0_i32_8 = arith.constant 0 : i32
    %9 = arith.cmpi eq, %arg1, %c0_i32_8 : i32
    %10 = arith.extui %9 : i1 to i32
    %c0_i32_9 = arith.constant 0 : i32
    %11 = arith.cmpi ne, %10, %c0_i32_9 : i32
    scf.if %11 {
      %c0_10 = arith.constant 0 : index
      %c0_11 = arith.constant 0 : index
      %12 = vector.load %arg4[%c0_10, %c0_11] : memref<16x64xf32, #tpu.memory_space<vmem>>, vector<16x64xf32>
      %c0_12 = arith.constant 0 : index
      %c0_13 = arith.constant 0 : index
      %13 = vector.load %arg13[%c0_12, %c0_13] : memref<16x64xf32, #tpu.memory_space<vmem>>, vector<16x64xf32>
      %cst_14 = arith.constant 0.899999976 : f32
      %14 = vector.broadcast %cst_14 : f32 to vector<16x64xf32>
      %15 = arith.mulf %14, %13 : vector<16x64xf32>
      %cst_15 = arith.constant 1.000000e-01 : f32
      %16 = vector.broadcast %cst_15 : f32 to vector<16x64xf32>
      %17 = arith.mulf %16, %12 : vector<16x64xf32>
      %18 = arith.addf %15, %17 : vector<16x64xf32>
      %c0_16 = arith.constant 0 : index
      %c0_17 = arith.constant 0 : index
      %19 = vector.load %arg10[%c0_16, %c0_17] : memref<16x64xf32, #tpu.memory_space<vmem>>, vector<16x64xf32>
      tpu.vector_store %arg10[%c0_16, %c0_17], %18 {strides = array<i32>} : memref<16x64xf32, #tpu.memory_space<vmem>>, vector<16x64xf32>,
      %c0_18 = arith.constant 0 : index
      %c0_19 = arith.constant 0 : index
      %20 = vector.load %arg6[%c0_18, %c0_19] : memref<64x64xf32, #tpu.memory_space<vmem>>, vector<64x64xf32>
      %cst_20 = arith.constant dense<0.000000e+00> : vector<16x64xf32>
      %21 = tpu.matmul %18, %20, %cst_20 {dimension_numbers = #tpu.dot_dimension_numbers<[1], [0], [0], [1], [0, 0, 1, 1], [], []>} : vector<16x64xf32>, vector<64x64xf32>, vector<16x64xf32> -> vector<16x64xf32>
      %c0_21 = arith.constant 0 : index
      %c0_22 = arith.constant 0 : index
      %22 = vector.load %arg7[%c0_21, %c0_22] : memref<1x64xf32, #tpu.memory_space<vmem>>, vector<1x64xf32>
      %23 = vector.broadcast %22 : vector<1x64xf32> to vector<16x64xf32>
      %24 = arith.addf %21, %23 : vector<16x64xf32>
      %cst_23 = arith.constant 0.000000e+00 : f32
      %25 = vector.broadcast %cst_23 : f32 to vector<16x64xf32>
      %26 = arith.maximumf %24, %25 : vector<16x64xf32>
      %c0_24 = arith.constant 0 : index
      %c0_25 = arith.constant 0 : index
      %27 = vector.load %arg8[%c0_24, %c0_25] : memref<1x64xf32, #tpu.memory_space<vmem>>, vector<1x64xf32>
      %28 = vector.broadcast %27 : vector<1x64xf32> to vector<16x64xf32>
      %29 = arith.mulf %26, %28 : vector<16x64xf32>
      %cst_26 = arith.constant dense<0.000000e+00> : vector<16xf32>
      %30 = vector.multi_reduction <add>, %29, %cst_26 [1] : vector<16x64xf32> to vector<16xf32>
      %31 = vector.shape_cast %30 : vector<16xf32> to vector<16x1xf32>
      %c0_27 = arith.constant 0 : index
      %c0_28 = arith.constant 0 : index
      %32 = memref.load %arg9[%c0_27, %c0_28] : memref<1x1xf32, #tpu.memory_space<smem>>
      %33 = vector.broadcast %32 : f32 to vector<16x1xf32>
      %34 = arith.addf %31, %33 : vector<16x1xf32>
      %c0_29 = arith.constant 0 : index
      %c0_30 = arith.constant 0 : index
      %35 = vector.load %arg11[%c0_29, %c0_30] : memref<16x1xf32, #tpu.memory_space<vmem>>, vector<16x1xf32>
      tpu.vector_store %arg11[%c0_29, %c0_30], %34 {strides = array<i32>} : memref<16x1xf32, #tpu.memory_space<vmem>>, vector<16x1xf32>,
      %c0_31 = arith.constant 0 : index
      %c0_32 = arith.constant 0 : index
      %36 = vector.load %arg5[%c0_31, %c0_32] : memref<2x16xf32, #tpu.memory_space<vmem>>, vector<2x16xf32>
      %cst_33 = arith.constant dense<0.000000e+00> : vector<2x64xf32>
      %37 = tpu.matmul %36, %18, %cst_33 {dimension_numbers = #tpu.dot_dimension_numbers<[1], [0], [0], [1], [0, 0, 1, 1], [], []>} : vector<2x16xf32>, vector<16x64xf32>, vector<2x64xf32> -> vector<2x64xf32>
      %c0_34 = arith.constant 0 : index
      %c0_35 = arith.constant 0 : index
      %c0_36 = arith.constant 0 : index
      %38 = vector.load %arg12[%c0_34, %c0_35, %c0_36] : memref<1x2x64xf32, #tpu.memory_space<vmem>>, vector<1x2x64xf32>
      %39 = vector.shape_cast %38 : vector<1x2x64xf32> to vector<2x64xf32>
      %40 = vector.shape_cast %37 : vector<2x64xf32> to vector<1x2x64xf32>
      tpu.vector_store %arg12[%c0_34, %c0_35, %c0_36], %40 {strides = array<i32>} : memref<1x2x64xf32, #tpu.memory_space<vmem>>, vector<1x2x64xf32>,
    } else {
    }
    return
  }
  func.func @transform_0(%arg0: i32, %arg1: i32) -> (i32, i32) {
    %c0_i32 = arith.constant 0 : i32
    return %arg0, %arg1 : i32, i32
  }
  func.func @transform_1(%arg0: i32, %arg1: i32) -> (i32, i32) {
    %c0_i32 = arith.constant 0 : i32
    %c0_i32_0 = arith.constant 0 : i32
    return %arg1, %c0_i32 : i32, i32
  }
  func.func @transform_2(%arg0: i32, %arg1: i32) -> (i32, i32) {
    %c0_i32 = arith.constant 0 : i32
    %c0_i32_0 = arith.constant 0 : i32
    return %arg0, %c0_i32 : i32, i32
  }
  func.func @transform_3(%arg0: i32, %arg1: i32) -> (i32, i32) {
    %c0_i32 = arith.constant 0 : i32
    %c0_i32_0 = arith.constant 0 : i32
    return %c0_i32, %arg0 : i32, i32
  }
  func.func @transform_4(%arg0: i32, %arg1: i32) -> (i32, i32) {
    %c0_i32 = arith.constant 0 : i32
    %c0_i32_0 = arith.constant 0 : i32
    %c0_i32_1 = arith.constant 0 : i32
    return %c0_i32, %c0_i32_0 : i32, i32
  }
  func.func @transform_5(%arg0: i32, %arg1: i32) -> (i32, i32) {
    %c0_i32 = arith.constant 0 : i32
    %c0_i32_0 = arith.constant 0 : i32
    %c0_i32_1 = arith.constant 0 : i32
    return %c0_i32, %c0_i32_0 : i32, i32
  }
  func.func @transform_6(%arg0: i32, %arg1: i32) -> (i32, i32) {
    %c0_i32 = arith.constant 0 : i32
    %c0_i32_0 = arith.constant 0 : i32
    %c0_i32_1 = arith.constant 0 : i32
    return %c0_i32, %c0_i32_0 : i32, i32
  }
  func.func @transform_7(%arg0: i32, %arg1: i32) -> (i32, i32) {
    %c0_i32 = arith.constant 0 : i32
    %c0_i32_0 = arith.constant 0 : i32
    %c0_i32_1 = arith.constant 0 : i32
    return %c0_i32, %c0_i32_0 : i32, i32
  }
  func.func @transform_8(%arg0: i32, %arg1: i32) -> (i32, i32) {
    %c0_i32 = arith.constant 0 : i32
    %c0_i32_0 = arith.constant 0 : i32
    return %arg0, %c0_i32 : i32, i32
  }
  func.func @transform_9(%arg0: i32, %arg1: i32) -> (i32, i32) {
    %c0_i32 = arith.constant 0 : i32
    %c0_i32_0 = arith.constant 0 : i32
    return %arg0, %c0_i32 : i32, i32
  }
  func.func @transform_10(%arg0: i32, %arg1: i32) -> (i32, i32, i32) {
    %c0_i32 = arith.constant 0 : i32
    %c0_i32_0 = arith.constant 0 : i32
    %c0_i32_1 = arith.constant 0 : i32
    return %arg0, %c0_i32, %c0_i32_0 : i32, i32, i32
  }
}

</mosaic_0001>

<bundles_post_ra>
// kernel: tpu_custom_call.1
= control target key start
LH: loop header
LB: loop body
LE: loop exit
PB: predicated region body
PF: predicated region fallthrough
CT: control target
= control target key end

     0   :  { %17 = vsyncpa [#allocation5], 0  ;;  %s830_s0 = inlined_call_operand.hbm [shape: bf16[16,16], index: 0, kind: input, shape index: {}]   ;;  %s831_s1 = inlined_call_operand.hbm [shape: bf16[16,64], index: 1, kind: input, shape index: {}]   ;;  %s832_s2 = inlined_call_operand.hbm [shape: f32[16,64], index: 2, kind: input, shape index: {}]   ;;  %s833_s3 = inlined_call_operand.vmem [shape: f32[2,16], index: 3, kind: input, shape index: {}]   ;;  %s834_s4 = inlined_call_operand.hbm [shape: f32[64,64], index: 4, kind: input, shape index: {}]   ;;  %s835_s5 = inlined_call_operand.vmem [shape: f32[1,64], index: 5, kind: input, shape index: {}]   ;;  %s836_s6 = inlined_call_operand.vmem [shape: f32[1,64], index: 6, kind: input, shape index: {}]   ;;  %s837_s7 = inlined_call_operand.<no memory space> [shape: f32[1,1], index: 7, kind: input, shape index: {}]   ;;  %s838_s8 = inlined_call_operand.hbm [shape: f32[16,64], index: 8, kind: output, shape index: {0}]   ;;  %s839_s9 = inlined_call_operand.vmem [shape: f32[16,1], index: 9, kind: output, shape index: {1}]   ;;  %s840_s10 = inlined_call_operand.hbm [shape: f32[1,2,64], index: 10, kind: output, shape index: {2}]  }
   0x1   :  { %18 = vsyncpa [#allocation8], 0 }
   0x2   :  { %19 = vsyncpa [#allocation11], 0 }
   0x3   :  { %20 = vsyncpa [#allocation6], 0 }
   0x4   :  { %21 = vsyncpa [#allocation14], 0  ;;  %s644_s13 = smov [#allocation7]   ;;  %s645_s15 = smov [#allocation4]  }
   0x5   :  { %s39_s14 = sshll.u32 %s644_s13, 4  ;;  %s27_s16 = sshll.u32 %s645_s15, 4  ;;  %s40_s14 = int_to_ptr.vmem [resolvable:$true] %s39_s14  ;;  %s712_s16 = int_to_ptr.vmem [resolvable:$true] %s27_s16 }
   0x6   :  { %s502_s19 = scalar_lea.hbm %s831_s1, 128 }
   0x7   :  { %p503_p0 = scmp.ne.s32.totalorder %s831_s1, %s502_s19  ;;  %p506_p1 = scmp.lt.u32.totalorder %s502_s19, %s831_s1 }
   0x9   :  { %p508_p2 = pnand %p506_p1, %p503_p0 }
   0xb   :  { %511 = shalt.err (!%p508_p2)
}
   0xc   :  { %s512_s24 = scalar_lea.vmem %s40_s14, 128  ;;  %p517_p4 = scmp.lt.s32.totalorder %s40_s14, %s40_s14 }
   0xd   :  { %p513_p3 = scmp.ne.s32.totalorder %s40_s14, %s512_s24  ;;  %p518_p5 = scmp.lt.s32.totalorder %s512_s24, %s512_s24 }
   0xf   :  { %p519_p6 = por %p518_p5, %p517_p4 }
  0x11   :  { %p520_p7 = pnand %p519_p6, %p513_p3 }
  0x13   :  { %523 = shalt.err (!%p520_p7)
}
  0x14   :  { %s646_s25 = smov 64   ;;  %s647_s26 = smov 4  }
  0x15   :  { %45 = dma.hbm_to_vmem [thread:$0]  %s831_s1, 128, %s40_s14, [#allocation8], %s646_s25, %s646_s25, %s647_s26  }
  0x16   :  { %s524_s11 = scalar_lea.hbm %s830_s0, 128 }
  0x17   :  { %p525_p8 = scmp.ne.s32.totalorder %s830_s0, %s524_s11  ;;  %p528_p9 = scmp.lt.u32.totalorder %s524_s11, %s830_s0 }
  0x19   :  { %p530_p10 = pnand %p528_p9, %p525_p8 }
  0x1b   :  { %533 = shalt.err (!%p530_p10)
}
  0x1c   :  { %s534_s18 = scalar_lea.vmem %s712_s16, 128  ;;  %p539_p12 = scmp.lt.s32.totalorder %s712_s16, %s712_s16 }
  0x1d   :  { %p535_p11 = scmp.ne.s32.totalorder %s712_s16, %s534_s18  ;;  %p540_p13 = scmp.lt.s32.totalorder %s534_s18, %s534_s18 }
  0x1f   :  { %p541_p0 = por %p540_p13, %p539_p12 }
  0x21   :  { %p542_p1 = pnand %p541_p0, %p535_p11 }
  0x23   :  { %545 = shalt.err (!%p542_p1)
}
  0x24   :  { %33 = dma.hbm_to_vmem [thread:$0]  %s830_s0, 128, %s712_s16, [#allocation5], %s646_s25, %s646_s25, %s647_s26  }
  0x25   :  { %s648_s19 = smov [#allocation9]   ;;  %s546_s23 = scalar_lea.hbm %s832_s2, 256 }
  0x26   :  { %s51_s20 = sshll.u32 %s648_s19, 4  ;;  %p547_p2 = scmp.ne.s32.totalorder %s832_s2, %s546_s23  ;;  %s52_s20 = int_to_ptr.vmem [resolvable:$true] %s51_s20 }
  0x27   :  { %p550_p3 = scmp.lt.u32.totalorder %s546_s23, %s832_s2 }
  0x29   :  { %p552_p4 = pnand %p550_p3, %p547_p2 }
  0x2b   :  { %555 = shalt.err (!%p552_p4)
}
  0x2c   :  { %s556_s30 = scalar_lea.vmem %s52_s20, 256  ;;  %p561_p6 = scmp.lt.s32.totalorder %s52_s20, %s52_s20 }
  0x2d   :  { %p557_p5 = scmp.ne.s32.totalorder %s52_s20, %s556_s30  ;;  %p562_p7 = scmp.lt.s32.totalorder %s556_s30, %s556_s30 }
  0x2f   :  { %p563_p8 = por %p562_p7, %p561_p6 }
  0x31   :  { %p564_p9 = pnand %p563_p8, %p557_p5 }
  0x33   :  { %567 = shalt.err (!%p564_p9)
}
  0x34   :  { %s649_s0 = smov 128   ;;  %s650_s16 = smov 8  }
  0x35   :  { %57 = dma.hbm_to_vmem [thread:$0]  %s832_s2, 256, %s52_s20, [#allocation8], %s649_s0, %s649_s0, %s650_s16  }
  0x36   :  { %s651_s11 = smov [#allocation10]   ;;  %s568_s17 = scalar_lea.hbm %s834_s4, 1024 }
  0x37   :  { %s65_s12 = sshll.u32 %s651_s11, 4  ;;  %p569_p10 = scmp.ne.s32.totalorder %s834_s4, %s568_s17  ;;  %s66_s12 = int_to_ptr.vmem [resolvable:$true] %s65_s12 }
  0x38   :  { %p572_p11 = scmp.lt.u32.totalorder %s568_s17, %s834_s4 }
  0x3a   :  { %p574_p12 = pnand %p572_p11, %p569_p10 }
  0x3c   :  { %577 = shalt.err (!%p574_p12)
}
  0x3d   :  { %s578_s21 = scalar_lea.vmem %s66_s12, 1024  ;;  %p583_p0 = scmp.lt.s32.totalorder %s66_s12, %s66_s12 }
  0x3e   :  { %p579_p13 = scmp.ne.s32.totalorder %s66_s12, %s578_s21  ;;  %p584_p1 = scmp.lt.s32.totalorder %s578_s21, %s578_s21 }
  0x40   :  { %p585_p2 = por %p584_p1, %p583_p0 }
  0x42   :  { %p586_p3 = pnand %p585_p2, %p579_p13 }
  0x44   :  { %589 = shalt.err (!%p586_p3)
}
  0x45   :  { %71 = dma.hbm_to_vmem [thread:$0]  %s834_s4, 1024, %s66_s12, [#allocation11], %s649_s0, %s649_s0, %s650_s16  }
  0x46   :  { %634 = dma.done.wait [#allocation5], 128  }
  0x47   :  { %635 = vsyncadd [#allocation5], 4294967168 }
  0x48   :  { %636 = dma.done.wait [#allocation8], 384  }
  0x49   :  { %637 = vsyncadd [#allocation8], 4294966912 }
  0x4a   :  { %638 = dma.done.wait [#allocation11], 1024  }
  0x4b   :  { %639 = vsyncadd [#allocation11], 4294966272  ;;  %vm95_vm0 = vcmask 523264   ;;  %v652_v0 = vmov 0.0   ;;  %vm653_vm1 = vmmov 0   ;;  %v500_v1 = vld [vmem:[#allocation7] sm:$0xff]  }
  0x4c   :  { %96 = vst.msk [vmem:[#allocation2] sm:$0xff] %vm95_vm0, %v652_v0  ;;  %97 = vst.msk [vmem:[#allocation2 + $0x8] sm:$0xff] %vm95_vm0, %v652_v0  ;;  %436 = vmatprep.subr.bf16.mxu0 %v652_v0  ;;  %438 = vmatprep.mubr.msk.bf16.mxu0 %vm653_vm1, %v652_v0  ;;  %v501_v2 = vld [vmem:[#allocation4] sm:$0xff]   ;;  %vm115_vm2 = vcmask 130048   ;;  %v181_v4 = vld [vmem:[#allocation10 + $0x8] sm:$0xff]  ;;  %v654_v15 = vmov 0.0|0.0  }
  0x4d   :  { %437 = vmatpush3.bf16.msra.mxu0 %v500_v1  ;;  %v180_v3 = vld [vmem:[#allocation10] sm:$0xff]  ;;  %v182_v6 = vld [vmem:[#allocation10 + $0x10] sm:$0xff]  ;;  %v183_v7 = vld [vmem:[#allocation10 + $0x18] sm:$0xff]  ;;  %vm374_vm3 = vcmask 517120   ;;  %s656_s29 = smov [#allocation13]  }
  0x4e   :  { %v468_v5 = vpack.c.bf16 %v181_v4, %v180_v3  ;;  %v472_v8 = vpack.c.bf16 %v183_v7, %v182_v6  ;;  %v184_v9 = vld [vmem:[#allocation10 + $0x20] sm:$0xff]  ;;  %v185_v10 = vld [vmem:[#allocation10 + $0x28] sm:$0xff]  ;;  %v186_v11 = vld [vmem:[#allocation10 + $0x30] sm:$0xff]  ;;  %484 = vmatprep.subr.bf16.mxu0 %v654_v15  ;;  %s396_s30 = sshll.u32 %s656_s29, 4  ;;  %s397_s30 = int_to_ptr.vmem [resolvable:$true] %s396_s30 }
  0x4f   :  { %v476_v12 = vpack.c.bf16 %v185_v10, %v184_v9  ;;  %v187_v13 = vld [vmem:[#allocation10 + $0x38] sm:$0xff]  ;;  %v168_v24 = vld [vmem:[#allocation9] sm:$0xff] }
  0x50   :  { %439 = vmatmul.mubr.msk.bf16.vlgmr.msra.gmra.mrb[0].mxu0 %vm115_vm2, %v501_v2  ;;  %469 = vmatprep.subr.bf16.mxu1 %v468_v5  ;;  %v480_v14 = vpack.c.bf16 %v187_v13, %v186_v11  ;;  %v169_v25 = vld [vmem:[#allocation9 + $0x8] sm:$0xff]  ;;  %v174_v26 = vmul.f32 0.1, %v168_v24  ;;  %v300_v35 = vld [vmem:[%s833_s3] sm:$0x3]  ;;  %s655_s3 = smov [#allocation12]  }
  0x51   :  { %465 = vmatprep.mubr.msk.f32.mxu0 %vm653_vm1, %v652_v0  ;;  %471 = vmatpush3.bf16.msra.mxu1 %v468_v5  ;;  %v175_v29 = vmul.f32 0.1, %v169_v25  ;;  %v416_v36 = vld [vmem:[%s835_s5] ss:$0 sm:$0xff]  ;;  %s381_s5 = sshll.u32 %s655_s3, 4  ;;  %s382_s5 = int_to_ptr.vmem [resolvable:$true] %s381_s5 }
  0x52   :  { %473 = vmatprep.subr.bf16.mxu1 %v472_v8  ;;  %v419_v41 = vld [vmem:[%s836_s6] ss:$0 sm:$0xff]  ;;  %s590_s6 = scalar_lea.vmem %s382_s5, 256  ;;  %p595_p5 = scmp.lt.s32.totalorder %s382_s5, %s382_s5 }
  0x53   :  { %v98_v16 = vld [vmem:[#allocation2] sm:$0xff]  ;;  %v99_v18 = vld [vmem:[#allocation2 + $0x8] sm:$0xff]  ;;  %p591_p4 = scmp.ne.s32.totalorder %s382_s5, %s590_s6  ;;  %p596_p6 = scmp.lt.s32.totalorder %s590_s6, %s590_s6 }
  0x55   :  { %475 = vmatpush3.bf16.msra.mxu1 %v472_v8  ;;  %p597_p7 = por %p596_p6, %p595_p5 }
  0x56   :  { %477 = vmatprep.subr.bf16.mxu1 %v476_v12 }
  0x57   :  { %p598_p8 = pnand %p597_p7, %p591_p4 }
  0x59   :  { %479 = vmatpush3.bf16.msra.mxu1 %v476_v12 }
  0x5a   :  { %481 = vmatprep.subr.bf16.mxu1 %v480_v14 }
  0x5d   :  { %483 = vmatpush3.bf16.msra.mxu1 %v480_v14 }
 0x123   :  { %v153_v17 = vpop.f32.mrb[0].mxu0 }
 0x124   :  { %v160_v19 = vadd.f32 %v153_v17, %v98_v16  ;;  %v440_v20 = vpop.f32.mrb[1].mxu0 }
 0x125   :  { %v156_v21 = vpop.f32.mrb[2].mxu0 }
 0x126   :  { %163 = vst.msk [vmem:[#allocation2] sm:$0xff] %vm95_vm0, %v160_v19  ;;  %v161_v22 = vadd.f32 %v156_v21, %v99_v18  ;;  %v441_v23 = vpop.f32.mrb[3].mxu0 }
 0x128   :  { %164 = vst.msk [vmem:[#allocation2 + $0x8] sm:$0xff] %vm95_vm0, %v161_v22 }
 0x12d   :  { %v170_v27 = vld [vmem:[#allocation2] sm:$0xff] }
 0x12e   :  { %v172_v28 = vmul.f32 0.9, %v170_v27 }
 0x12f   :  { %v171_v30 = vld [vmem:[#allocation2 + $0x8] sm:$0xff] }
 0x130   :  { %v176_v31 = vadd.f32 %v174_v26, %v172_v28  ;;  %v173_v32 = vmul.f32 0.9, %v171_v30 }
 0x132   :  { %458 = vmatprep.mubr.msk.f32.mxu1 %vm95_vm0, %v176_v31  ;;  %178 = vst.msk [vmem:[#allocation12] sm:$0xff] %vm95_vm0, %v176_v31  ;;  %v177_v33 = vadd.f32 %v175_v29, %v173_v32 }
 0x134   :  { %459 = vmatmul.mubr.msk.f32.vlgmr.msra.gmra.mrb[0].mxu1 %vm95_vm0, %v177_v33  ;;  %179 = vst.msk [vmem:[#allocation12 + $0x8] sm:$0xff] %vm95_vm0, %v177_v33  ;;  %v485_v34 = vpack.c.bf16 %v177_v33, %v176_v31 }
 0x136   :  { %486 = vmatpush3.bf16.msra.mxu0 %v485_v34 }
 0x139   :  { %466 = vmatmul.mubr.msk.f32.vlgmr.msra.gmra.mrb[4].mxu0 %vm115_vm2, %v300_v35 }
 0x207   :  { %v460_v37 = vpop.f32.mrb[0].mxu1 }
 0x208   :  { %v273_v38 = vadd.f32 %v460_v37, %v416_v36  ;;  %v267_v39 = vpop.f32.mrb[1].mxu1 }
 0x209   :  { %v268_v40 = vadd.f32 %v416_v36, %v267_v39 }
 0x20a   :  { %v277_v42 = vmax.f32 %v273_v38, 0.0 }
 0x20b   :  { %v276_v43 = vmax.f32 %v268_v40, 0.0 }
 0x20c   :  { %v286_v46 = vmul.f32 %v419_v41, %v277_v42  ;;  %v370_v48 = vpop.f32.mrb[4].mxu0 }
 0x20d   :  { %v285_v44 = vmul.f32 %v419_v41, %v276_v43  ;;  %v467_v49 = vpop.f32.mrb[5].mxu0  ;;  %375 = vst.msk [vmem:[#allocation13] sm:$0x3] %vm374_vm3, %v370_v48 }
 0x20e   :  { %v290_v47 = vsel %vm95_vm0, %v286_v46, 0.0 }
 0x20f   :  { %v287_v45 = vsel %vm95_vm0, %v285_v44, 0.0 }
 0x210   :  { %288 = vadd.xlane.f32.xlu0 %v287_v45 }
 0x214   :  { %291 = vadd.xlane.f32.xlu0 %v290_v47 }
 0x215   :  { %601 = shalt.err (!%p598_p8)
}
 0x216   :  { %s602_s11 = scalar_lea.hbm %s838_s8, 256 }
 0x217   :  { %p603_p9 = scmp.ne.s32.totalorder %s838_s8, %s602_s11  ;;  %p606_p10 = scmp.lt.u32.totalorder %s602_s11, %s838_s8 }
 0x219   :  { %p608_p11 = pnand %p606_p10, %p603_p9 }
 0x21b   :  { %611 = shalt.err (!%p608_p11)
}
 0x21c   :  { %387 = dma.vmem_to_hbm [thread:$0]  %s382_s5, 256, %s838_s8, [#allocation6], %s649_s0, %s649_s0, %s650_s16  }
 0x21d   :  { %s612_s14 = scalar_lea.vmem %s397_s30, 32  ;;  %p617_p13 = scmp.lt.s32.totalorder %s397_s30, %s397_s30 }
 0x21e   :  { %p613_p12 = scmp.ne.s32.totalorder %s397_s30, %s612_s14  ;;  %p618_p0 = scmp.lt.s32.totalorder %s612_s14, %s612_s14 }
 0x220   :  { %p619_p1 = por %p618_p0, %p617_p13 }
 0x222   :  { %p620_p2 = pnand %p619_p1, %p613_p12 }
 0x224   :  { %623 = shalt.err (!%p620_p2)
}
 0x225   :  { %s624_s2 = scalar_lea.hbm %s840_s10, 32 }
 0x226   :  { %p625_p3 = scmp.ne.s32.totalorder %s840_s10, %s624_s2  ;;  %p628_p4 = scmp.lt.u32.totalorder %s624_s2, %s840_s10 }
 0x228   :  { %p630_p5 = pnand %p628_p4, %p625_p3 }
 0x22a   :  { %633 = shalt.err (!%p630_p5)
}
 0x22b   :  { %399 = dma.vmem_to_hbm [thread:$0]  %s397_s30, 32, %s840_s10, [#allocation14]   ;;  %v294_v50 = vstv %s837_s7  ;;  %vm297_vm4 = vcmask 7168  }
 0x29d   :  { %v289_v51 = vpop.xlane.xlu0 %288 }
 0x29e   :  { %v295_v52 = vadd.f32 %v294_v50, %v289_v51 }
 0x2a0   :  { %298 = vst.msk [vmem:[%s839_s9] sm:$0xff] %vm297_vm4, %v295_v52 }
 0x2a1   :  { %v292_v53 = vpop.xlane.xlu0 %291 }
 0x2a2   :  { %v296_v54 = vadd.f32 %v294_v50, %v292_v53 }
 0x2a4   :  { %299 = vst.msk [vmem:[%s839_s9 + $0x8] sm:$0xff] %vm297_vm4, %v296_v54 }
 0x2a5   :  { %640 = dma.done.wait [#allocation6], 256  }
 0x2a6   :  { %641 = vsyncadd [#allocation6], 4294967040 }
 0x2a7   :  { %642 = dma.done.wait [#allocation14], 32  }
 0x2a8   :  { %643 = vsyncadd [#allocation14], 4294967264 }
 0x2a9   :  { %408 = vsyncpa [#allocation5], 1 }
 0x2aa   :  { %409 = vsyncpa [#allocation8], 1 }
 0x2ab   :  { %410 = vsyncpa [#allocation11], 1 }
 0x2ac   :  { %411 = vsyncpa [#allocation6], 1 }
 0x2ad   :  { %412 = vsyncpa [#allocation14], 1 }

</bundles_post_ra>
